<compile_context>
chip_gen: v7x
topology: tpu7x:2x2x1
jax: 0.10.0
libtpu: 0.0.40
codegen_flags: <defaults>
</compile_context>

<pallas_src>
import jax
import jax.numpy as jnp
from jax.experimental import pallas as pl
from jax.experimental.pallas import tpu as pltpu


def _mlp_kernel(x_ref, w1t_ref, b1_ref, w2_ref, b2_ref, w3_ref, b3_ref, o_ref):
    """Fused 3-layer MLP on one batch tile.

    Layer 1 runs batch-major straight off the contiguous [TILE_B, in_dim]
    x tile; one XLU transpose then puts the batch on the lane axis so layers
    2/3 and the output stay lane-dense:
        h1  = relu(x @ W1^T + b1)      [TILE_B, H]   (batch-major)
        h1t = h1^T                     [H, TILE_B]   (single in-kernel transpose)
        h2  = relu(W2 @ h1t + b2)      [H, TILE_B]
        y   = W3 @ h2 + b3             [O, TILE_B]
    Matmul inputs are in the compute dtype (f32 or bf16); accumulation, bias
    add and ReLU are f32.
    """
    cd = w2_ref.dtype

    x = x_ref[...].astype(cd)                                 # [TILE_B, in_dim]
    h1 = jnp.dot(x, w1t_ref[...], preferred_element_type=jnp.float32)
    h1 = jnp.maximum(h1 + b1_ref[...], 0.0)                   # [TILE_B, H], f32

    # One transpose (f32, XLU) so everything downstream is lane-dense.
    h1t = h1.T.astype(cd)                                     # [H, TILE_B]

    h2 = jnp.dot(w2_ref[...], h1t, preferred_element_type=jnp.float32)
    h2 = jnp.maximum(h2 + b2_ref[...], 0.0).astype(cd)        # [H, TILE_B]

    y = jnp.dot(w3_ref[...], h2, preferred_element_type=jnp.float32)
    o_ref[...] = (y + b3_ref[...]).astype(o_ref.dtype)        # [O, TILE_B]


def database_network_forward(x, params, *, tile_b=8192,
                             compute_dtype=jnp.bfloat16):
    """Equivalent of DatabaseNetwork.forward(x).

    onHull is unconditionally True in the reference module, so forward(x) is
    exactly the regression sub-model: x [batch, in_dim] -> [batch, out_dim].
    """
    batch, in_dim = x.shape
    hidden = params["w1"].shape[0]
    out_dim = params["w3"].shape[0]

    # Tiny operands: reshape/cast once in the wrapper (negligible traffic).
    w1t = params["w1"].T.astype(compute_dtype)                 # [in_dim, H]
    w2 = params["w2"].astype(compute_dtype)                    # [H, H]
    w3 = params["w3"].astype(compute_dtype)                    # [O, H]
    b1 = params["b1"].reshape(1, hidden).astype(jnp.float32)   # row (layer 1 batch-major)
    b2 = params["b2"].reshape(hidden, 1).astype(jnp.float32)   # col
    b3 = params["b3"].reshape(out_dim, 1).astype(jnp.float32)  # col

    # Batch tile on the lane axis: multiple of 128, large to amortize the
    # ~0.35 us per-grid-step overhead, clamped so n_tiles >= 2 when the batch
    # allows it (v7x megacore: 2 TensorCores share the "parallel" grid axis).
    tile_b = max(128, (tile_b // 128) * 128)
    half = -(-batch // 2)
    tile_b = min(tile_b, max(128, ((half + 127) // 128) * 128))
    n_tiles = pl.cdiv(batch, tile_b)
    b_pad = n_tiles * tile_b

    # Pad only in the ragged case; otherwise x is fed untouched (no wrapper
    # transpose/cast -> no extra HBM round-trip).  Padded rows produce garbage
    # through bias+ReLU but are sliced off below -- keep that slice.
    if b_pad != batch:
        x = jnp.pad(x, ((0, b_pad - batch), (0, 0)))

    def _resident(a):
        # Whole array as one block with a constant block index: Pallas keeps
        # it VMEM-resident across the batch grid (no re-DMA per tile).
        return pl.BlockSpec(a.shape, lambda i: (0, 0))

    grid_spec = pltpu.PrefetchScalarGridSpec(
        num_scalar_prefetch=0,
        grid=(n_tiles,),
        in_specs=[
            pl.BlockSpec((tile_b, in_dim), lambda i: (i, 0)),   # contiguous x tile
            _resident(w1t), _resident(b1),
            _resident(w2), _resident(b2),
            _resident(w3), _resident(b3),
        ],
        out_specs=pl.BlockSpec((out_dim, tile_b), lambda i: (0, i)),
    )

    flops = 2 * b_pad * (in_dim * hidden + hidden * hidden + hidden * out_dim)
    bytes_accessed = (
        int(x.size) * x.dtype.itemsize
        + sum(int(a.size) * a.dtype.itemsize
              for a in (w1t, b1, w2, b2, w3, b3))
        + b_pad * out_dim * 4)
    cost = pl.CostEstimate(flops=flops, transcendentals=0,
                           bytes_accessed=bytes_accessed)

    y_t = pl.pallas_call(
        _mlp_kernel,
        out_shape=jax.ShapeDtypeStruct((out_dim, b_pad), jnp.float32),
        grid_spec=grid_spec,
        compiler_params=pltpu.CompilerParams(
            dimension_semantics=("parallel",),
            vmem_limit_bytes=32 * 1024 * 1024),   # guard v5e's 16 MiB default
        cost_estimate=cost,
    )(x, w1t, b1, w2, b2, w3, b3)

    # Lane-dense [out_dim, b_pad] -> PyTorch layout [batch, out_dim].
    return y_t[:, :batch].T


def make_params(in_dim=4, hidden=32, out_dim=1, seed=0):
    """Deterministic synthetic weights for the regression MLP.

    Weights are stored in torch Linear orientation [out_features, in_features],
    biases as 1-D [out_features] f32.
    """
    keys = jax.random.split(jax.random.PRNGKey(seed), 6)
    s1 = 1.0 / jnp.sqrt(jnp.float32(in_dim))
    s2 = 1.0 / jnp.sqrt(jnp.float32(hidden))
    return {
        "w1": jax.random.uniform(keys[0], (hidden, in_dim), jnp.float32, -s1, s1),
        "b1": jax.random.uniform(keys[1], (hidden,), jnp.float32, -s1, s1),
        "w2": jax.random.uniform(keys[2], (hidden, hidden), jnp.float32, -s2, s2),
        "b2": jax.random.uniform(keys[3], (hidden,), jnp.float32, -s2, s2),
        "w3": jax.random.uniform(keys[4], (out_dim, hidden), jnp.float32, -s2, s2),
        "b3": jax.random.uniform(keys[5], (out_dim,), jnp.float32, -s2, s2),
    }


def _reference_forward(x, p, compute_dtype=jnp.float32):
    """Pure-JAX reference (standard [batch, feature] layout), mirroring the
    kernel's compute-dtype casts so the comparison is apples-to-apples."""
    cd = compute_dtype
    h1 = jnp.maximum(
        jnp.dot(x.astype(cd), p["w1"].T.astype(cd),
                preferred_element_type=jnp.float32) + p["b1"][None, :], 0.0)
    h2 = jnp.maximum(
        jnp.dot(h1.astype(cd), p["w2"].T.astype(cd),
                preferred_element_type=jnp.float32) + p["b2"][None, :], 0.0)
    return (jnp.dot(h2.astype(cd), p["w3"].T.astype(cd),
                    preferred_element_type=jnp.float32) + p["b3"][None, :])


if __name__ == "__main__":
    batch, in_dim, hidden, out_dim = 2, 4, 32, 1

    key = jax.random.PRNGKey(0)
    x = jax.random.normal(key, (batch, in_dim), dtype=jnp.float32)
    params = make_params(in_dim=in_dim, hidden=hidden, out_dim=out_dim, seed=0)

    # f32 compute path: tight numerical check against the pure-JAX reference.
    y = jax.block_until_ready(
        database_network_forward(x, params, compute_dtype=jnp.float32))
    y_ref = _reference_forward(x, params, compute_dtype=jnp.float32)
    assert y.shape == (batch, out_dim), y.shape
    assert jnp.allclose(y, y_ref, atol=1e-5, rtol=1e-5), (y, y_ref)

    # Default bf16 matmul-input path (f32 accumulation) -- looser tolerances.
    y_bf = jax.block_until_ready(database_network_forward(x, params))
    y_ref_bf = _reference_forward(x, params, compute_dtype=jnp.bfloat16)
    assert y_bf.shape == (batch, out_dim), y_bf.shape
    assert jnp.allclose(y_bf, y_ref_bf, atol=2e-2, rtol=2e-2), (y_bf, y_ref_bf)
    assert jnp.allclose(y_bf, y_ref, atol=5e-2, rtol=5e-2), (y_bf, y_ref)

    print("KERNEL_OK")
</pallas_src>

<mosaic_0001>
module attributes {stable_mosaic.version = 11 : i64} {
  func.func @_mlp_kernel(%arg0: i32, %arg1: memref<128x4xf32, #tpu.memory_space<vmem>>, %arg2: memref<4x32xf32, #tpu.memory_space<vmem>>, %arg3: memref<1x32xf32, #tpu.memory_space<vmem>>, %arg4: memref<32x32xf32, #tpu.memory_space<vmem>>, %arg5: memref<32x1xf32, #tpu.memory_space<vmem>>, %arg6: memref<1x32xf32, #tpu.memory_space<vmem>>, %arg7: memref<1x1xf32, #tpu.memory_space<vmem>>, %arg8: memref<1x128xf32, #tpu.memory_space<vmem>>) attributes {dimension_semantics = [#tpu.dimension_semantics<parallel>], iteration_bounds = array<i64: 1>, scalar_prefetch = 0 : i64, scratch_operands = 0 : i64, tpu.core_type = #tpu.core_type<tc>, window_params = [{transform_indices = @transform_0, window_bounds = array<i64: 128, 4>}, {pipeline_mode = #tpu.pipeline_mode<synchronous>, transform_indices = @transform_1, window_bounds = array<i64: 4, 32>}, {pipeline_mode = #tpu.pipeline_mode<synchronous>, transform_indices = @transform_2, window_bounds = array<i64: 1, 32>}, {pipeline_mode = #tpu.pipeline_mode<synchronous>, transform_indices = @transform_3, window_bounds = array<i64: 32, 32>}, {pipeline_mode = #tpu.pipeline_mode<synchronous>, transform_indices = @transform_4, window_bounds = array<i64: 32, 1>}, {pipeline_mode = #tpu.pipeline_mode<synchronous>, transform_indices = @transform_5, window_bounds = array<i64: 1, 32>}, {pipeline_mode = #tpu.pipeline_mode<synchronous>, transform_indices = @transform_6, window_bounds = array<i64: 1, 1>}, {transform_indices = @transform_7, window_bounds = array<i64: 1, 128>}]} {
    %c0 = arith.constant 0 : index
    %c0_0 = arith.constant 0 : index
    %0 = vector.load %arg1[%c0, %c0_0] : memref<128x4xf32, #tpu.memory_space<vmem>>, vector<128x4xf32>
    %c0_1 = arith.constant 0 : index
    %c0_2 = arith.constant 0 : index
    %1 = vector.load %arg2[%c0_1, %c0_2] : memref<4x32xf32, #tpu.memory_space<vmem>>, vector<4x32xf32>
    %cst = arith.constant dense<0.000000e+00> : vector<128x32xf32>
    %2 = tpu.matmul %0, %1, %cst {dimension_numbers = #tpu.dot_dimension_numbers<[1], [0], [0], [1], [0, 0, 1, 1], [], []>} : vector<128x4xf32>, vector<4x32xf32>, vector<128x32xf32> -> vector<128x32xf32>
    %c0_3 = arith.constant 0 : index
    %c0_4 = arith.constant 0 : index
    %3 = vector.load %arg3[%c0_3, %c0_4] : memref<1x32xf32, #tpu.memory_space<vmem>>, vector<1x32xf32>
    %4 = vector.broadcast %3 : vector<1x32xf32> to vector<128x32xf32>
    %5 = arith.addf %2, %4 : vector<128x32xf32>
    %cst_5 = arith.constant 0.000000e+00 : f32
    %6 = vector.broadcast %cst_5 : f32 to vector<128x32xf32>
    %7 = arith.maximumf %5, %6 : vector<128x32xf32>
    %8 = tpu.transpose %7, [1, 0] : vector<128x32xf32> -> vector<32x128xf32>
    %c0_6 = arith.constant 0 : index
    %c0_7 = arith.constant 0 : index
    %9 = vector.load %arg4[%c0_6, %c0_7] : memref<32x32xf32, #tpu.memory_space<vmem>>, vector<32x32xf32>
    %cst_8 = arith.constant dense<0.000000e+00> : vector<32x128xf32>
    %10 = tpu.matmul %9, %8, %cst_8 {dimension_numbers = #tpu.dot_dimension_numbers<[1], [0], [0], [1], [0, 0, 1, 1], [], []>} : vector<32x32xf32>, vector<32x128xf32>, vector<32x128xf32> -> vector<32x128xf32>
    %c0_9 = arith.constant 0 : index
    %c0_10 = arith.constant 0 : index
    %11 = vector.load %arg5[%c0_9, %c0_10] : memref<32x1xf32, #tpu.memory_space<vmem>>, vector<32x1xf32>
    %12 = vector.broadcast %11 : vector<32x1xf32> to vector<32x128xf32>
    %13 = arith.addf %10, %12 : vector<32x128xf32>
    %cst_11 = arith.constant 0.000000e+00 : f32
    %14 = vector.broadcast %cst_11 : f32 to vector<32x128xf32>
    %15 = arith.maximumf %13, %14 : vector<32x128xf32>
    %c0_12 = arith.constant 0 : index
    %c0_13 = arith.constant 0 : index
    %16 = vector.load %arg6[%c0_12, %c0_13] : memref<1x32xf32, #tpu.memory_space<vmem>>, vector<1x32xf32>
    %cst_14 = arith.constant dense<0.000000e+00> : vector<1x128xf32>
    %17 = tpu.matmul %16, %15, %cst_14 {dimension_numbers = #tpu.dot_dimension_numbers<[1], [0], [0], [1], [0, 0, 1, 1], [], []>} : vector<1x32xf32>, vector<32x128xf32>, vector<1x128xf32> -> vector<1x128xf32>
    %c0_15 = arith.constant 0 : index
    %c0_16 = arith.constant 0 : index
    %18 = vector.load %arg7[%c0_15, %c0_16] : memref<1x1xf32, #tpu.memory_space<vmem>>, vector<1x1xf32>
    %19 = vector.broadcast %18 : vector<1x1xf32> to vector<1x128xf32>
    %20 = arith.addf %17, %19 : vector<1x128xf32>
    %c0_17 = arith.constant 0 : index
    %c0_18 = arith.constant 0 : index
    %21 = vector.load %arg8[%c0_17, %c0_18] : memref<1x128xf32, #tpu.memory_space<vmem>>, vector<1x128xf32>
    tpu.vector_store %arg8[%c0_17, %c0_18], %20 {strides = array<i32>} : memref<1x128xf32, #tpu.memory_space<vmem>>, vector<1x128xf32>,
    return
  }
  func.func @transform_0(%arg0: i32) -> (i32, i32) {
    %c0_i32 = arith.constant 0 : i32
    %c0_i32_0 = arith.constant 0 : i32
    return %arg0, %c0_i32 : i32, i32
  }
  func.func @transform_1(%arg0: i32) -> (i32, i32) {
    %c0_i32 = arith.constant 0 : i32
    %c0_i32_0 = arith.constant 0 : i32
    %c0_i32_1 = arith.constant 0 : i32
    return %c0_i32, %c0_i32_0 : i32, i32
  }
  func.func @transform_2(%arg0: i32) -> (i32, i32) {
    %c0_i32 = arith.constant 0 : i32
    %c0_i32_0 = arith.constant 0 : i32
    %c0_i32_1 = arith.constant 0 : i32
    return %c0_i32, %c0_i32_0 : i32, i32
  }
  func.func @transform_3(%arg0: i32) -> (i32, i32) {
    %c0_i32 = arith.constant 0 : i32
    %c0_i32_0 = arith.constant 0 : i32
    %c0_i32_1 = arith.constant 0 : i32
    return %c0_i32, %c0_i32_0 : i32, i32
  }
  func.func @transform_4(%arg0: i32) -> (i32, i32) {
    %c0_i32 = arith.constant 0 : i32
    %c0_i32_0 = arith.constant 0 : i32
    %c0_i32_1 = arith.constant 0 : i32
    return %c0_i32, %c0_i32_0 : i32, i32
  }
  func.func @transform_5(%arg0: i32) -> (i32, i32) {
    %c0_i32 = arith.constant 0 : i32
    %c0_i32_0 = arith.constant 0 : i32
    %c0_i32_1 = arith.constant 0 : i32
    return %c0_i32, %c0_i32_0 : i32, i32
  }
  func.func @transform_6(%arg0: i32) -> (i32, i32) {
    %c0_i32 = arith.constant 0 : i32
    %c0_i32_0 = arith.constant 0 : i32
    %c0_i32_1 = arith.constant 0 : i32
    return %c0_i32, %c0_i32_0 : i32, i32
  }
  func.func @transform_7(%arg0: i32) -> (i32, i32) {
    %c0_i32 = arith.constant 0 : i32
    %c0_i32_0 = arith.constant 0 : i32
    return %c0_i32, %arg0 : i32, i32
  }
}

</mosaic_0001>

<bundles_post_ra>
// kernel: tpu_custom_call.1
= control target key start
LH: loop header
LB: loop body
LE: loop exit
PB: predicated region body
PF: predicated region fallthrough
CT: control target
= control target key end

     0   :  { %s985_s0 = inlined_call_operand.vmem [shape: f32[128,4], index: 0, kind: input, shape index: {}]   ;;  %s986_s1 = inlined_call_operand.vmem [shape: f32[4,32], index: 1, kind: input, shape index: {}]   ;;  %s987_s2 = inlined_call_operand.vmem [shape: f32[1,32], index: 2, kind: input, shape index: {}]   ;;  %s988_s3 = inlined_call_operand.vmem [shape: f32[32,32], index: 3, kind: input, shape index: {}]   ;;  %s989_s4 = inlined_call_operand.vmem [shape: f32[32,1], index: 4, kind: input, shape index: {}]   ;;  %s990_s5 = inlined_call_operand.vmem [shape: f32[1,32], index: 5, kind: input, shape index: {}]   ;;  %s991_s6 = inlined_call_operand.<no memory space> [shape: f32[1,1], index: 6, kind: input, shape index: {}]   ;;  %s992_s7 = inlined_call_operand.hbm [shape: f32[1,128], index: 7, kind: output, shape index: {}]  }
   0x1   :  { %v12_v0 = vstv %s991_s6 }
   0x2   :  { %13 = vst [vmem:[#allocation2] sm:$0x1] %v12_v0 }
   0x3   :  { %v45_v1 = vld [vmem:[%s986_s1] sm:$0xf]  ;;  %vm102_vm0 = vcmask 1043456   ;;  %vm53_vm1 = vcmask 31744   ;;  %v30_v3 = vld [vmem:[%s985_s0 + $0x8] sm:$0xff]  ;;  %v31_v4 = vld [vmem:[%s985_s0 + $0x10] sm:$0xff] }
   0x4   :  { %v29_v2 = vld [vmem:[%s985_s0] sm:$0xff]  ;;  %625 = vmatprep.subr.msk.mxu0 %vm102_vm0, %v45_v1  ;;  %v32_v5 = vld [vmem:[%s985_s0 + $0x18] sm:$0xff] }
   0x5   :  { %627 = vmatprep.mubr.msk.f32.mxu0 %vm53_vm1, %v29_v2  ;;  %626 = vmatpush3.msk.msra.mxu0 %vm102_vm0, %v45_v1  ;;  %v33_v6 = vld [vmem:[%s985_s0 + $0x20] sm:$0xff] }
   0x6   :  { %628 = vmatmul.mubr.msk.f32.vlgmr.msra.gmra.mrb[0].mxu0 %vm53_vm1, %v30_v3 }
   0x7   :  { %630 = vmatprep.mubr.msk.f32.mxu0 %vm53_vm1, %v31_v4 }
   0x8   :  { %14 = vsyncpa [#allocation4], 0  ;;  %v34_v7 = vld [vmem:[%s985_s0 + $0x28] sm:$0xff]  ;;  %v35_v8 = vld [vmem:[%s985_s0 + $0x30] sm:$0xff]  ;;  %vm295_vm2 = vcmask 261120   ;;  %v785_v20 = vmov 0  }
   0x9   :  { %v36_v9 = vld [vmem:[%s985_s0 + $0x38] sm:$0xff]  ;;  %v37_v10 = vld [vmem:[%s985_s0 + $0x40] sm:$0xff]  ;;  %v38_v11 = vld [vmem:[%s985_s0 + $0x48] sm:$0xff]  ;;  %759 = vset.pattern.permute.xlu0 %v785_v20  ;;  %760 = vset.pattern.permute.xlu1 %v785_v20  ;;  %vm787_vm4 = vmmov 0   ;;  %s789_s26 = smov [#allocation3]  }
   0xa   :  { %631 = vmatmul.mubr.msk.f32.gmra.mrb[2].mxu0 %vm53_vm1, %v32_v5  ;;  %v39_v12 = vld [vmem:[%s985_s0 + $0x50] sm:$0xff]  ;;  %v40_v13 = vld [vmem:[%s985_s0 + $0x58] sm:$0xff]  ;;  %v41_v14 = vld [vmem:[%s985_s0 + $0x60] sm:$0xff]  ;;  %s536_s27 = sshll.u32 %s789_s26, 4  ;;  %s537_s27 = int_to_ptr.vmem [resolvable:$true] %s536_s27 }
   0xb   :  { %633 = vmatprep.mubr.msk.f32.mxu0 %vm53_vm1, %v33_v6  ;;  %v42_v15 = vld [vmem:[%s985_s0 + $0x68] sm:$0xff]  ;;  %v43_v16 = vld [vmem:[%s985_s0 + $0x70] sm:$0xff]  ;;  %v44_v17 = vld [vmem:[%s985_s0 + $0x78] sm:$0xff]  ;;  %s761_s28 = scalar_lea.vmem %s537_s27, 16  ;;  %s765_s29 = scalar_lea.vmem %s537_s27, 32 }
   0xc   :  { %v267_v18 = vld [vmem:[%s988_s3] sm:$0xff]  ;;  %v273_v21 = vld [vmem:[%s989_s4 + $0x10] sm:$0xff]  ;;  %v272_v22 = vld [vmem:[%s989_s4 + $0x8] sm:$0xff]  ;;  %p762_p0 = scmp.ne.s32.totalorder %s537_s27, %s761_s28  ;;  %p766_p1 = scmp.lt.s32.totalorder %s537_s27, %s537_s27 }
   0xd   :  { %683 = vmatprep.mubr.msk.f32.mxu1 %vm295_vm2, %v267_v18  ;;  %v271_v19 = vld [vmem:[%s989_s4] sm:$0xff]  ;;  %287 = vperm.xlu1 %760, %v273_v21   ;;  %v274_v23 = vld [vmem:[%s989_s4 + $0x18] sm:$0xff]  ;;  %vm921_vm3 = vmpackc.low %vm295_vm2, %vm295_vm2  ;;  %p767_p2 = scmp.lt.s32.totalorder %s765_s29, %s761_s28 }
   0xe   :  { %634 = vmatmul.mubr.msk.f32.gmra.mrb[4].mxu0 %vm53_vm1, %v34_v7  ;;  %277 = vperm.xlu0 %759, %v271_v19   ;;  %v446_v24 = vld [vmem:[#allocation2] sm:$0x1]  ;;  %v268_v19 = vld [vmem:[%s988_s3 + $0x8] sm:$0xff]  ;;  %v269_v20 = vld [vmem:[%s988_s3 + $0x10] sm:$0xff] }
   0xf   :  { %636 = vmatprep.mubr.msk.f32.mxu0 %vm53_vm1, %v35_v8  ;;  %v544_v25 = vld [vmem:[%s987_s2] ss:$0 sm:$0xff]  ;;  %v270_v21 = vld [vmem:[%s988_s3 + $0x18] sm:$0xff]  ;;  %p768_p3 = por %p767_p2, %p766_p1 }
  0x11   :  { %292 = vperm.xlu1 %760, %v274_v23   ;;  %v788_v23 = vmov 0.0   ;;  %p769_p4 = pnand %p768_p3, %p762_p0 }
  0x12   :  { %637 = vmatmul.mubr.msk.f32.gmra.mrb[6].mxu0 %vm53_vm1, %v36_v9  ;;  %282 = vperm.xlu0 %759, %v272_v22   ;;  %v786_v22 = vmov 0.0|0.0  }
  0x13   :  { %639 = vmatprep.mubr.msk.f32.mxu0 %vm53_vm1, %v37_v10  ;;  %748 = vmatprep.subr.bf16.mxu0 %v786_v22 }
  0x16   :  { %640 = vmatmul.mubr.msk.f32.gmra.mrb[8].mxu0 %vm53_vm1, %v38_v11  ;;  %449 = vperm.xlu0 %759, %v446_v24  }
  0x17   :  { %642 = vmatprep.mubr.msk.f32.mxu0 %vm53_vm1, %v39_v12 }
  0x1a   :  { %643 = vmatmul.mubr.msk.f32.gmra.mrb[10].mxu0 %vm53_vm1, %v40_v13 }
  0x1b   :  { %645 = vmatprep.mubr.msk.f32.mxu0 %vm53_vm1, %v41_v14 }
  0x1e   :  { %646 = vmatmul.mubr.msk.f32.gmra.mrb[12].mxu0 %vm53_vm1, %v42_v15 }
  0x1f   :  { %648 = vmatprep.mubr.msk.f32.mxu0 %vm53_vm1, %v43_v16 }
  0x22   :  { %649 = vmatmul.mubr.msk.f32.gmra.mrb[14].mxu0 %vm53_vm1, %v44_v17 }
  0x23   :  { %697 = vmatprep.mubr.msk.f32.mxu0 %vm787_vm4, %v788_v23 }
  0x8d   :  { %v278_v24 = vpop.permute.xlu0 %277 }
  0xd9   :  { %v629_v26 = vpop.f32.mrb[0].mxu0 }
  0xda   :  { %v178_v27 = vadd.f32 %v629_v26, %v544_v25  ;;  %v172_v28 = vpop.f32.mrb[1].mxu0  ;;  %v283_v26 = vpop.permute.xlu0 %282 }
  0xdb   :  { %v173_v29 = vadd.f32 %v544_v25, %v172_v28 }
  0xdc   :  { %v252_v30 = vmax.f32 %v178_v27, 0.0 }
  0xdd   :  { %v251_v31 = vmax.f32 %v173_v29, 0.0  ;;  %v632_v32 = vpop.f32.mrb[2].mxu0 }
  0xde   :  { %v188_v33 = vadd.f32 %v632_v32, %v544_v25  ;;  %v182_v34 = vpop.f32.mrb[3].mxu0 }
  0xdf   :  { %v183_v36 = vadd.f32 %v544_v25, %v182_v34  ;;  %v700_v37 = vpack.c.bf16 %v252_v30, %v251_v31 }
  0xe0   :  { %v254_v38 = vmax.f32 %v188_v33, 0.0 }
  0xe1   :  { %v253_v39 = vmax.f32 %v183_v36, 0.0  ;;  %702 = vmatprep.subr.msk.bf16.mxu1 %vm921_vm3, %v700_v37  ;;  %v635_v40 = vpop.f32.mrb[4].mxu0 }
  0xe2   :  { %705 = vmatpush3.bf16.xpose.msk.msra.mxu1 %vm921_vm3, %v700_v37  ;;  %v198_v41 = vadd.f32 %v635_v40, %v544_v25  ;;  %v192_v42 = vpop.f32.mrb[5].mxu0 }
  0xe3   :  { %v706_v43 = vpack.c.bf16 %v254_v38, %v253_v39  ;;  %v193_v44 = vadd.f32 %v544_v25, %v192_v42  ;;  %v445_v42 = vld [vmem:[%s990_s5] sm:$0x1] }
  0xe4   :  { %v256_v45 = vmax.f32 %v198_v41, 0.0 }
  0xe5   :  { %708 = vmatprep.subr.msk.bf16.mxu1 %vm921_vm3, %v706_v43  ;;  %v255_v46 = vmax.f32 %v193_v44, 0.0  ;;  %v638_v47 = vpop.f32.mrb[6].mxu0 }
  0xe6   :  { %v208_v48 = vadd.f32 %v638_v47, %v544_v25  ;;  %v202_v49 = vpop.f32.mrb[7].mxu0 }
  0xe7   :  { %v712_v50 = vpack.c.bf16 %v256_v45, %v255_v46  ;;  %v203_v51 = vadd.f32 %v544_v25, %v202_v49  ;;  %v450_v46 = vpop.permute.xlu0 %449 }
  0xe8   :  { %v258_v52 = vmax.f32 %v208_v48, 0.0 }
  0xe9   :  { %v257_v53 = vmax.f32 %v203_v51, 0.0  ;;  %v641_v54 = vpop.f32.mrb[8].mxu0 }
  0xea   :  { %711 = vmatpush3.bf16.xpose.msk.msra.mxu1 %vm921_vm3, %v706_v43  ;;  %v218_v55 = vadd.f32 %v641_v54, %v544_v25  ;;  %v212_v56 = vpop.f32.mrb[9].mxu0  ;;  %v452_v43 = vlaneseq }
  0xeb   :  { %714 = vmatprep.subr.msk.bf16.mxu1 %vm921_vm3, %v712_v50  ;;  %v718_v57 = vpack.c.bf16 %v258_v52, %v257_v53  ;;  %v213_v58 = vadd.f32 %v544_v25, %v212_v56 }
  0xec   :  { %v260_v59 = vmax.f32 %v218_v55, 0.0  ;;  %v453_v44 = vshrl.u32 %v452_v43, 7 }
  0xed   :  { %v259_v60 = vmax.f32 %v213_v58, 0.0  ;;  %v644_v61 = vpop.f32.mrb[10].mxu0 }
  0xee   :  { %v228_v62 = vadd.f32 %v644_v61, %v544_v25  ;;  %v222_v63 = vpop.f32.mrb[11].mxu0  ;;  %v454_v45 = vsub.s32 0, %v453_v44 }
  0xef   :  { %v724_v0 = vpack.c.bf16 %v260_v59, %v259_v60  ;;  %v223_v1 = vadd.f32 %v544_v25, %v222_v63 }
  0xf0   :  { %v262_v2 = vmax.f32 %v228_v62, 0.0  ;;  %v455_v47 = vrot.slane %v450_v46, %v454_v45 }
  0xf1   :  { %v261_v3 = vmax.f32 %v223_v1, 0.0  ;;  %v647_v4 = vpop.f32.mrb[12].mxu0 }
  0xf2   :  { %717 = vmatpush3.bf16.xpose.msk.msra.mxu1 %vm921_vm3, %v712_v50  ;;  %v238_v5 = vadd.f32 %v647_v4, %v544_v25  ;;  %v232_v6 = vpop.f32.mrb[13].mxu0 }
  0xf3   :  { %720 = vmatprep.subr.msk.bf16.mxu1 %vm921_vm3, %v718_v57  ;;  %v730_v7 = vpack.c.bf16 %v262_v2, %v261_v3  ;;  %v233_v8 = vadd.f32 %v544_v25, %v232_v6 }
  0xf4   :  { %v264_v9 = vmax.f32 %v238_v5, 0.0 }
  0xf5   :  { %v263_v10 = vmax.f32 %v233_v8, 0.0  ;;  %v650_v11 = vpop.f32.mrb[14].mxu0 }
  0xf6   :  { %v248_v12 = vadd.f32 %v650_v11, %v544_v25  ;;  %v242_v13 = vpop.f32.mrb[15].mxu0 }
  0xf7   :  { %v736_v14 = vpack.c.bf16 %v264_v9, %v263_v10  ;;  %v243_v15 = vadd.f32 %v544_v25, %v242_v13  ;;  %v288_v25 = vpop.permute.xlu1 %287 }
  0xf8   :  { %v266_v16 = vmax.f32 %v248_v12, 0.0 }
  0xf9   :  { %v265_v17 = vmax.f32 %v243_v15, 0.0 }
  0xfa   :  { %723 = vmatpush3.bf16.xpose.msk.msra.mxu1 %vm921_vm3, %v718_v57 }
  0xfb   :  { %726 = vmatprep.subr.msk.bf16.mxu1 %vm921_vm3, %v724_v0  ;;  %v742_v18 = vpack.c.bf16 %v266_v16, %v265_v17  ;;  %v293_v34 = vpop.permute.xlu1 %292 }
 0x102   :  { %729 = vmatpush3.bf16.xpose.msk.msra.mxu1 %vm921_vm3, %v724_v0 }
 0x103   :  { %732 = vmatprep.subr.msk.bf16.mxu1 %vm921_vm3, %v730_v7 }
 0x10a   :  { %735 = vmatpush3.bf16.xpose.msk.msra.mxu1 %vm921_vm3, %v730_v7 }
 0x10b   :  { %738 = vmatprep.subr.msk.bf16.mxu1 %vm921_vm3, %v736_v14 }
 0x112   :  { %741 = vmatpush3.bf16.xpose.msk.msra.mxu1 %vm921_vm3, %v736_v14 }
 0x113   :  { %744 = vmatprep.subr.msk.bf16.mxu1 %vm921_vm3, %v742_v18 }
 0x11a   :  { %747 = vmatpush3.bf16.xpose.msk.msra.mxu1 %vm921_vm3, %v742_v18 }
 0x121   :  { %684 = vmatmul.mubr.msk.f32.vlgmr.msra.gmra.mrb[0].mxu1 %vm295_vm2, %v268_v19 }
 0x122   :  { %686 = vmatprep.mubr.msk.f32.mxu1 %vm295_vm2, %v269_v20 }
 0x125   :  { %687 = vmatmul.mubr.msk.f32.gmra.mrb[2].mxu1 %vm295_vm2, %v270_v21 }
 0x1f4   :  { %v685_v27 = vpop.f32.mrb[0].mxu1 }
 0x1f5   :  { %v428_v28 = vadd.f32 %v685_v27, %v283_v26  ;;  %v422_v29 = vpop.f32.mrb[1].mxu1 }
 0x1f6   :  { %v423_v30 = vadd.f32 %v422_v29, %v278_v24 }
 0x1f7   :  { %v442_v31 = vmax.f32 %v428_v28, 0.0 }
 0x1f8   :  { %v441_v32 = vmax.f32 %v423_v30, 0.0  ;;  %v688_v33 = vpop.f32.mrb[2].mxu1 }
 0x1f9   :  { %v438_v35 = vadd.f32 %v688_v33, %v293_v34  ;;  %v432_v36 = vpop.f32.mrb[3].mxu1 }
 0x1fa   :  { %v749_v37 = vpack.c.bf16 %v442_v31, %v441_v32  ;;  %v433_v38 = vadd.f32 %v432_v36, %v288_v25 }
 0x1fb   :  { %v444_v39 = vmax.f32 %v438_v35, 0.0 }
 0x1fc   :  { %v443_v40 = vmax.f32 %v433_v38, 0.0  ;;  %750 = vmatpush3.bf16.msra.mxu0 %v749_v37 }
 0x1fd   :  { %751 = vmatprep.subr.bf16.mxu0 %v786_v22 }
 0x1fe   :  { %v752_v41 = vpack.c.bf16 %v444_v39, %v443_v40 }
 0x200   :  { %753 = vmatpush3.bf16.msra.mxu0 %v752_v41 }
 0x203   :  { %698 = vmatmul.mubr.msk.f32.vlgmr.msra.gmra.mrb[16].mxu0 %vm295_vm2, %v445_v42 }
 0x2d6   :  { %v525_v48 = vpop.f32.mrb[16].mxu0 }
 0x2d7   :  { %v526_v49 = vadd.f32 %v525_v48, %v455_v47  ;;  %v699_v50 = vpop.f32.mrb[17].mxu0 }
 0x2d9   :  { %529 = vst [vmem:[#allocation3] sm:$0x1] %v526_v49 }
 0x2da   :  { %772 = shalt.err (!%p769_p4)
}
 0x2db   :  { %s773_s8 = scalar_lea.hbm %s992_s7, 16 }
 0x2dc   :  { %p774_p5 = scmp.ne.s32.totalorder %s992_s7, %s773_s8  ;;  %p777_p6 = scmp.lt.u32.totalorder %s773_s8, %s992_s7 }
 0x2de   :  { %p779_p7 = pnand %p777_p6, %p774_p5 }
 0x2e0   :  { %782 = shalt.err (!%p779_p7)
}
 0x2e1   :  { %539 = dma.vmem_to_hbm [thread:$0]  %s537_s27, 16, %s992_s7, [#allocation4]  }
 0x2e2   :  { %783 = dma.done.wait [#allocation4], 16  }
 0x2e3   :  { %784 = vsyncadd [#allocation4], 4294967280 }
 0x2e4   :  { %543 = vsyncpa [#allocation4], 1 }

</bundles_post_ra>
